<compile_context>
chip_gen: v6e
topology: v6e:2x2x1
jax: 0.10.0
libtpu: 0.0.40
codegen_flags: <defaults>
</compile_context>

<pallas_src>
import jax
import jax.numpy as jnp
from jax.experimental import pallas as pl
from jax.experimental.pallas import tpu as pltpu


def _normalize_kernel(scale_ref, bias_ref, x_ref, o_ref):
    # scale_ref / bias_ref: (TR, 1) f32 per-row constants (broadcast along lanes).
    # x_ref / o_ref:        (TR, TL) VMEM tiles. FMA in f32, cast only on store.
    x = x_ref[...].astype(jnp.float32)
    o_ref[...] = (x * scale_ref[...] + bias_ref[...]).astype(o_ref.dtype)


def _vmem_budget_bytes() -> int:
    # Generation-aware scoped-VMEM budget: v5e/v6e have 128 MiB physical VMEM,
    # v7x only 64 MiB. Leave ~16 MiB headroom and never request more than 64 MiB.
    try:
        cap = int(pltpu.get_tpu_info().vmem_capacity_bytes)
    except Exception:
        cap = 64 << 20  # conservative (v7x-sized) fallback
    return max(32 << 20, min(cap - (16 << 20), 64 << 20))


def _pick_tiles(nc: int, hw: int, dtype, target_bytes: int):
    itemsize = jnp.dtype(dtype).itemsize
    # Sublane packing multiple: 8 for f32, 16 for bf16, 32 for int8/fp8.
    sub = max(8, 32 // itemsize)
    row_bytes = hw * itemsize
    if sub * row_bytes <= target_bytes:
        # Full rows: each x/out DMA is a single contiguous HBM transfer and the
        # lane grid axis collapses to 1. Grow the row tile to fill the budget.
        tl = hw
        tr_target = max(sub, (target_bytes // row_bytes) // sub * sub)
        tr = nc if nc <= tr_target else tr_target
    else:
        # A single sublane-group of rows already exceeds the budget (huge H*W):
        # split the lane axis on the largest multiple of 128 that fits.
        tr = nc if nc < sub else sub
        tl = max(128, (target_bytes // (sub * itemsize)) // 128 * 128)
    return tr, tl


def normalize_by_channel_mean_std(x: jax.Array, mean: jax.Array, std: jax.Array) -> jax.Array:
    """Pallas TPU implementation of NormalizeByChannelMeanStd.forward.

    x:    (N, C, H, W)
    mean: (C,)
    std:  (C,)
    """
    N, C, H, W = x.shape
    assert mean.shape == (C,) and std.shape == (C,)
    NC, HW = N * C, H * W

    # Fold (x - mean) / std into x * scale + bias. Keep constants in f32; the
    # kernel does the FMA in f32 and casts on the store.
    scale = 1.0 / std.astype(jnp.float32)            # (C,)
    bias = -mean.astype(jnp.float32) * scale         # (C,)
    # Row r of the flattened slab is channel r % C.
    scale_rows = jnp.tile(scale, N)[:, None]         # (NC, 1) f32
    bias_rows = jnp.tile(bias, N)[:, None]           # (NC, 1) f32

    x2d = x.reshape(NC, HW)  # lane-dense layout: H*W maps to the 128-wide lane axis

    vmem_limit = _vmem_budget_bytes()
    # Double-buffered x + out blocks ~= 4x block bytes; /6 leaves ~1.5x headroom.
    target_bytes = max(2 << 20, vmem_limit // 6)
    tr, tl = _pick_tiles(NC, HW, x.dtype, target_bytes)

    row_blocks = pl.cdiv(NC, tr)
    lane_blocks = pl.cdiv(HW, tl)

    # v7x megacore: keep the leading parallel axis non-degenerate when possible
    # so both TensorCores get grid work (no effect on single-TC v5e/v6e).
    if row_blocks == 1 and lane_blocks > 1:
        grid = (lane_blocks, row_blocks)
        x_map = lambda j, i: (i, j)
        sb_map = lambda j, i: (i, 0)
    else:
        grid = (row_blocks, lane_blocks)
        x_map = lambda i, j: (i, j)
        sb_map = lambda i, j: (i, 0)

    itemsize = jnp.dtype(x.dtype).itemsize
    cost = pl.CostEstimate(
        flops=2 * NC * HW,
        transcendentals=0,
        bytes_accessed=2 * NC * HW * itemsize + 2 * NC * 4,
    )

    out2d = pl.pallas_call(
        _normalize_kernel,
        out_shape=jax.ShapeDtypeStruct((NC, HW), x.dtype),
        grid_spec=pltpu.PrefetchScalarGridSpec(
            num_scalar_prefetch=0,
            grid=grid,
            in_specs=[
                # Per-row scale/bias: tiny (TR, 1) f32 blocks, reused across lane tiles.
                pl.BlockSpec((tr, 1), sb_map),
                pl.BlockSpec((tr, 1), sb_map),
                # x: large lane-dense tiles (full rows in the common case).
                pl.BlockSpec((tr, tl), x_map),
            ],
            out_specs=pl.BlockSpec((tr, tl), x_map),
        ),
        compiler_params=pltpu.CompilerParams(
            # Pure elementwise -> every grid axis independent.
            dimension_semantics=("parallel", "parallel"),
            vmem_limit_bytes=vmem_limit,
        ),
        cost_estimate=cost,
    )(scale_rows, bias_rows, x2d)

    # TODO(synk): if this normalize sits next to another elementwise producer/consumer,
    # fuse it there instead of paying a separate 2x HBM round trip.
    return out2d.reshape(N, C, H, W)


if __name__ == "__main__":
    # Small shapes consistent with the module: batch=2, channels=4, spatial=16.
    N, C, H, W = 2, 4, 16, 16

    key = jax.random.PRNGKey(0)
    x = jax.random.normal(key, (N, C, H, W), dtype=jnp.float32)

    mean = jnp.array([0.485, 0.456, 0.406, 0.5], dtype=jnp.float32)
    std = jnp.array([0.229, 0.224, 0.225, 0.25], dtype=jnp.float32)

    out = normalize_by_channel_mean_std(x, mean, std)
    out = jax.block_until_ready(out)

    # Reference: PyTorch semantics (x - mean) / std with broadcasting.
    ref = (x - mean[None, :, None, None]) / std[None, :, None, None]
    assert out.shape == (N, C, H, W)
    assert out.dtype == jnp.float32
    # Kernel uses the algebraically equivalent fused form x*(1/std) + (-mean/std) in f32.
    assert jnp.allclose(out, ref, atol=1e-5, rtol=1e-5)

    print("KERNEL_OK")
</pallas_src>

<mosaic_0001>
module attributes {stable_mosaic.version = 11 : i64} {
  func.func @_normalize_kernel(%arg0: i32, %arg1: i32, %arg2: memref<8x1xf32, #tpu.memory_space<vmem>>, %arg3: memref<8x1xf32, #tpu.memory_space<vmem>>, %arg4: memref<8x256xf32, #tpu.memory_space<vmem>>, %arg5: memref<8x256xf32, #tpu.memory_space<vmem>>) attributes {dimension_semantics = [#tpu.dimension_semantics<parallel>, #tpu.dimension_semantics<parallel>], iteration_bounds = array<i64: 1, 1>, scalar_prefetch = 0 : i64, scratch_operands = 0 : i64, tpu.core_type = #tpu.core_type<tc>, window_params = [{transform_indices = @transform_0, window_bounds = array<i64: 8, 1>}, {transform_indices = @transform_1, window_bounds = array<i64: 8, 1>}, {transform_indices = @transform_2, window_bounds = array<i64: 8, 256>}, {transform_indices = @transform_3, window_bounds = array<i64: 8, 256>}]} {
    %c0 = arith.constant 0 : index
    %c0_0 = arith.constant 0 : index
    %0 = vector.load %arg4[%c0, %c0_0] : memref<8x256xf32, #tpu.memory_space<vmem>>, vector<8x256xf32>
    %c0_1 = arith.constant 0 : index
    %c0_2 = arith.constant 0 : index
    %1 = vector.load %arg2[%c0_1, %c0_2] : memref<8x1xf32, #tpu.memory_space<vmem>>, vector<8x1xf32>
    %2 = vector.broadcast %1 : vector<8x1xf32> to vector<8x256xf32>
    %3 = arith.mulf %0, %2 : vector<8x256xf32>
    %c0_3 = arith.constant 0 : index
    %c0_4 = arith.constant 0 : index
    %4 = vector.load %arg3[%c0_3, %c0_4] : memref<8x1xf32, #tpu.memory_space<vmem>>, vector<8x1xf32>
    %5 = vector.broadcast %4 : vector<8x1xf32> to vector<8x256xf32>
    %6 = arith.addf %3, %5 : vector<8x256xf32>
    %c0_5 = arith.constant 0 : index
    %c0_6 = arith.constant 0 : index
    %7 = vector.load %arg5[%c0_5, %c0_6] : memref<8x256xf32, #tpu.memory_space<vmem>>, vector<8x256xf32>
    tpu.vector_store %arg5[%c0_5, %c0_6], %6 {strides = array<i32>} : memref<8x256xf32, #tpu.memory_space<vmem>>, vector<8x256xf32>,
    return
  }
  func.func @transform_0(%arg0: i32, %arg1: i32) -> (i32, i32) {
    %c0_i32 = arith.constant 0 : i32
    %c0_i32_0 = arith.constant 0 : i32
    return %arg0, %c0_i32 : i32, i32
  }
  func.func @transform_1(%arg0: i32, %arg1: i32) -> (i32, i32) {
    %c0_i32 = arith.constant 0 : i32
    %c0_i32_0 = arith.constant 0 : i32
    return %arg0, %c0_i32 : i32, i32
  }
  func.func @transform_2(%arg0: i32, %arg1: i32) -> (i32, i32) {
    %c0_i32 = arith.constant 0 : i32
    return %arg0, %arg1 : i32, i32
  }
  func.func @transform_3(%arg0: i32, %arg1: i32) -> (i32, i32) {
    %c0_i32 = arith.constant 0 : i32
    return %arg0, %arg1 : i32, i32
  }
}

</mosaic_0001>

<bundles_post_ra>
// kernel: tpu_custom_call.1
= control target key start
LH: loop header
LB: loop body
LE: loop exit
PB: predicated region body
PF: predicated region fallthrough
CT: control target
= control target key end

     0   :  { %v74_v1 = vmov 0   ;;  %s111_s0 = inlined_call_operand.vmem [shape: f32[8,1], index: 0, kind: input, shape index: {}]   ;;  %s112_s1 = inlined_call_operand.vmem [shape: f32[8,1], index: 1, kind: input, shape index: {}]   ;;  %s113_s2 = inlined_call_operand.vmem [shape: f32[8,256], index: 2, kind: input, shape index: {}]   ;;  %s114_s3 = inlined_call_operand.hbm [shape: f32[8,256], index: 3, kind: output, shape index: {}]  }
   0x1   :  { %v17_v0 = vld [vmem:[%s111_s0] sm:$0xff]  ;;  %51 = vset.pattern.permute.xlu0 %v74_v1 }
   0x2   :  { %8 = vsyncpa [#allocation3], 0  ;;  %20 = vperm.xlu0 %51, %v17_v0   ;;  %v25_v2 = vld [vmem:[%s112_s1] sm:$0xff]  ;;  %v16_v5 = vld [vmem:[%s113_s2 + $0x8] sm:$0xff]  ;;  %s75_s20 = smov [#allocation2]  }
   0x3   :  { %v15_v4 = vld [vmem:[%s113_s2] sm:$0xff]  ;;  %s41_s0 = sshll.u32 %s75_s20, 4  ;;  %s42_s0 = int_to_ptr.vmem [resolvable:$true] %s41_s0 }
   0x4   :  { %s52_s1 = scalar_lea.vmem %s42_s0, 256  ;;  %p57_p1 = scmp.lt.s32.totalorder %s42_s0, %s42_s0 }
   0x5   :  { %p53_p0 = scmp.ne.s32.totalorder %s42_s0, %s52_s1  ;;  %p58_p2 = scmp.lt.s32.totalorder %s52_s1, %s52_s1 }
   0x6   :  { %28 = vperm.xlu0 %51, %v25_v2  }
   0x7   :  { %p59_p3 = por %p58_p2, %p57_p1 }
   0x9   :  { %p60_p4 = pnand %p59_p3, %p53_p0 }
  0x7d   :  { %v21_v3 = vpop.permute.xlu0 %20 }
  0x7e   :  { %v23_v6 = vmul.f32 %v21_v3, %v15_v4  ;;  %v24_v7 = vmul.f32 %v21_v3, %v16_v5 }
  0x81   :  { %v29_v8 = vpop.permute.xlu0 %28 }
  0x82   :  { %v31_v9 = vadd.f32 %v29_v8, %v23_v6  ;;  %v32_v10 = vadd.f32 %v29_v8, %v24_v7 }
  0x84   :  { %33 = vst [vmem:[#allocation2] sm:$0xff] %v31_v9  ;;  %34 = vst [vmem:[#allocation2 + $0x8] sm:$0xff] %v32_v10 }
  0x85   :  { %63 = shalt.err (!%p60_p4)
}
  0x86   :  { %44 = dma.vmem_to_hbm [thread:$0]  %s42_s0, 256, %s114_s3, [#allocation3]  }
  0x87   :  { %72 = dma.done.wait [#allocation3], 256  }
  0x88   :  { %73 = vsyncadd [#allocation3], 4294967040 }
  0x89   :  { %48 = vsyncpa [#allocation3], 1 }

</bundles_post_ra>
